<compile_context>
chip_gen: v5e
topology: v5e:2x2
jax: 0.10.0
libtpu: 0.0.40
codegen_flags: <defaults>
</compile_context>

<pallas_src>
import jax
import jax.numpy as jnp
from jax.experimental import pallas as pl
from jax.experimental.pallas import tpu as pltpu

LATENT_DIM = 3
NUM_CLASSES = 10
EMB_DIM = 16
IMG_DIM = 28 * 28
HIDDEN_DIM = 128
HEAD_DIM = 2 * LATENT_DIM  # fused [mu | logvar]


def encoder_kernel(label_ref,        # SMEM (B,)   int32
                   img_ref,          # VMEM (B, 784)  bf16
                   w_emb_ref,        # VMEM (10, 16)  f32
                   b_emb_ref,        # VMEM (1, 16)   f32
                   w_hid_img_ref,    # VMEM (784, 128) bf16
                   w_hid_lab_ref,    # VMEM (16, 128)  f32
                   b_hid_ref,        # VMEM (1, 128)   f32
                   w_head_ref,       # VMEM (128, 6)   f32
                   b_head_ref,       # VMEM (1, 6)     f32
                   out_ref):         # VMEM (B, 6)     f32
    B = img_ref.shape[0]

    # one_hot(label, 10).float() -- labels come from SMEM (scalar path).
    # B is small & static, so the scalar-broadcast compares are fully unrolled.
    class_iota = jax.lax.broadcasted_iota(jnp.int32, (B, NUM_CLASSES), 1)
    row_iota = jax.lax.broadcasted_iota(jnp.int32, (B, NUM_CLASSES), 0)
    one_hot = jnp.zeros((B, NUM_CLASSES), jnp.float32)
    for i in range(B):
        hit = jnp.logical_and(row_iota == i, class_iota == label_ref[i])
        one_hot = jnp.where(hit, 1.0, one_hot)

    # relu(label_embedding(one_hot))
    emb = jnp.dot(one_hot, w_emb_ref[...],
                  preferred_element_type=jnp.float32) + b_emb_ref[...]
    emb = jnp.maximum(emb, 0.0)                                      # (B, 16)

    # relu(fc_hidden(cat([img, emb], dim=1))) as a split matmul (no concat).
    # bf16 img/weight feed the MXU natively; accumulation stays f32.
    hidden = (jnp.dot(img_ref[...], w_hid_img_ref[...],
                      preferred_element_type=jnp.float32)
              + jnp.dot(emb, w_hid_lab_ref[...],
                        preferred_element_type=jnp.float32)
              + b_hid_ref[...])
    hidden = jnp.maximum(hidden, 0.0)                                # (B, 128)

    # Fused fc_mu | fc_logvar head: one MXU push, one (B, 6) store.
    out_ref[...] = jnp.dot(hidden, w_head_ref[...],
                           preferred_element_type=jnp.float32) + b_head_ref[...]


def init_params(key):
    """Deterministic parameter init (PyTorch Linear layout: weight (out, in))."""
    ks = jax.random.split(key, 8)

    def linear(kw, kb, out_dim, in_dim):
        bound = 1.0 / jnp.sqrt(in_dim)
        w = jax.random.uniform(kw, (out_dim, in_dim), jnp.float32, -bound, bound)
        b = jax.random.uniform(kb, (out_dim,), jnp.float32, -bound, bound)
        return w, b

    w_emb, b_emb = linear(ks[0], ks[1], EMB_DIM, NUM_CLASSES)
    w_hid, b_hid = linear(ks[2], ks[3], HIDDEN_DIM, IMG_DIM + EMB_DIM)
    w_mu, b_mu = linear(ks[4], ks[5], LATENT_DIM, HIDDEN_DIM)
    w_lv, b_lv = linear(ks[6], ks[7], LATENT_DIM, HIDDEN_DIM)
    return dict(w_emb=w_emb, b_emb=b_emb, w_hid=w_hid, b_hid=b_hid,
                w_mu=w_mu, b_mu=b_mu, w_lv=w_lv, b_lv=b_lv)


def prepare_params(p):
    """One-time re-layout (outside jit): transpose/split weights, pre-shape
    biases, fuse the mu/logvar head, and store the big weight in bf16."""
    return dict(
        w_emb_t=p["w_emb"].T.astype(jnp.float32),                       # (10, 16)
        b_emb=p["b_emb"].reshape(1, EMB_DIM).astype(jnp.float32),       # (1, 16)
        w_hid_img_t=p["w_hid"][:, :IMG_DIM].T.astype(jnp.bfloat16),     # (784, 128) bf16
        w_hid_lab_t=p["w_hid"][:, IMG_DIM:].T.astype(jnp.float32),      # (16, 128)
        b_hid=p["b_hid"].reshape(1, HIDDEN_DIM).astype(jnp.float32),    # (1, 128)
        w_head_t=jnp.concatenate([p["w_mu"].T, p["w_lv"].T],
                                 axis=1).astype(jnp.float32),           # (128, 6)
        b_head=jnp.concatenate([p["b_mu"], p["b_lv"]]
                               ).reshape(1, HEAD_DIM).astype(jnp.float32),  # (1, 6)
    )


@jax.jit
def encoder_forward(image, label, kp):
    B = image.shape[0]
    # Flatten NCHW row-major (== torch .view(B, -1)); bf16 halves the image DMA
    # and it is only ever used as an MXU operand.
    img_flat = image.reshape(B, IMG_DIM).astype(jnp.bfloat16)            # (B, 784)
    label_i32 = label.reshape(B).astype(jnp.int32)                       # (B,)

    vmem = pl.BlockSpec(memory_space=pltpu.MemorySpace.VMEM)
    smem = pl.BlockSpec(memory_space=pltpu.MemorySpace.SMEM)

    flops = 2 * B * (NUM_CLASSES * EMB_DIM + IMG_DIM * HIDDEN_DIM
                     + EMB_DIM * HIDDEN_DIM + HIDDEN_DIM * HEAD_DIM)
    bytes_accessed = (
        img_flat.size * 2 + B * 4
        + kp["w_emb_t"].size * 4 + kp["b_emb"].size * 4
        + kp["w_hid_img_t"].size * 2 + kp["w_hid_lab_t"].size * 4
        + kp["b_hid"].size * 4
        + kp["w_head_t"].size * 4 + kp["b_head"].size * 4
        + B * HEAD_DIM * 4)

    out = pl.pallas_call(
        encoder_kernel,
        out_shape=jax.ShapeDtypeStruct((B, HEAD_DIM), jnp.float32),
        in_specs=[smem, vmem, vmem, vmem, vmem, vmem, vmem, vmem, vmem],
        out_specs=vmem,
        cost_estimate=pl.CostEstimate(flops=flops, transcendentals=0,
                                      bytes_accessed=bytes_accessed),
    )(label_i32, img_flat,
      kp["w_emb_t"], kp["b_emb"],
      kp["w_hid_img_t"], kp["w_hid_lab_t"], kp["b_hid"],
      kp["w_head_t"], kp["b_head"])

    mu = out[:, :LATENT_DIM]
    logvar = out[:, LATENT_DIM:]
    return mu, logvar


def reference_forward(image, label, params):
    """Pure-JAX f32 reference mirroring the PyTorch forward."""
    B = image.shape[0]
    x = image.reshape(B, -1).astype(jnp.float32)
    oh = jax.nn.one_hot(label, NUM_CLASSES, dtype=jnp.float32)
    emb = jax.nn.relu(oh @ params["w_emb"].T + params["b_emb"])
    cat = jnp.concatenate([x, emb], axis=1)
    hid = jax.nn.relu(cat @ params["w_hid"].T + params["b_hid"])
    mu = hid @ params["w_mu"].T + params["b_mu"]
    logvar = hid @ params["w_lv"].T + params["b_lv"]
    return mu, logvar


if __name__ == "__main__":
    key = jax.random.PRNGKey(0)
    k_params, k_img, k_lab = jax.random.split(key, 3)

    params = init_params(k_params)
    kparams = prepare_params(params)            # one-time re-layout (not in jit)

    B = 4
    image = jax.random.normal(k_img, (B, 1, 28, 28), jnp.float32)     # NCHW
    label = jax.random.randint(k_lab, (B,), 0, NUM_CLASSES, jnp.int32)

    mu, logvar = encoder_forward(image, label, kparams)
    jax.block_until_ready((mu, logvar))

    mu_ref, logvar_ref = reference_forward(image, label, params)
    assert mu.shape == (B, LATENT_DIM) and logvar.shape == (B, LATENT_DIM)
    # bf16 operands on the 784-wide reduction (f32 accumulation) -> loose tol.
    assert jnp.allclose(mu, mu_ref, atol=3e-2), "mu mismatch vs reference"
    assert jnp.allclose(logvar, logvar_ref, atol=3e-2), "logvar mismatch vs reference"

    print("KERNEL_OK")
</pallas_src>

<mosaic_0001>
module attributes {stable_mosaic.version = 11 : i64} {
  func.func @encoder_kernel(%arg0: memref<4xi32, #tpu.memory_space<smem>>, %arg1: memref<4x784xbf16, #tpu.memory_space<vmem>>, %arg2: memref<10x16xf32, #tpu.memory_space<vmem>>, %arg3: memref<1x16xf32, #tpu.memory_space<vmem>>, %arg4: memref<784x128xbf16, #tpu.memory_space<vmem>>, %arg5: memref<16x128xf32, #tpu.memory_space<vmem>>, %arg6: memref<1x128xf32, #tpu.memory_space<vmem>>, %arg7: memref<128x6xf32, #tpu.memory_space<vmem>>, %arg8: memref<1x6xf32, #tpu.memory_space<vmem>>, %arg9: memref<4x6xf32, #tpu.memory_space<vmem>>) attributes {dimension_semantics = [], scalar_prefetch = 0 : i64, scratch_operands = 0 : i64, tpu.core_type = #tpu.core_type<tc>} {
    %0 = tpu.iota {dimensions = array<i32: 1>} : vector<4x10xi32>
    %1 = tpu.iota {dimensions = array<i32: 0>} : vector<4x10xi32>
    %cst = arith.constant 0.000000e+00 : f32
    %2 = vector.broadcast %cst : f32 to vector<4x10xf32>
    %c0_i32 = arith.constant 0 : i32
    %3 = vector.broadcast %c0_i32 : i32 to vector<4x10xi32>
    %4 = arith.cmpi eq, %1, %3 : vector<4x10xi32>
    %c0 = arith.constant 0 : index
    %5 = memref.load %arg0[%c0] : memref<4xi32, #tpu.memory_space<smem>>
    %6 = vector.broadcast %5 : i32 to vector<4x10xi32>
    %7 = arith.cmpi eq, %0, %6 : vector<4x10xi32>
    %8 = arith.andi %4, %7 : vector<4x10xi1>
    %cst_0 = arith.constant 1.000000e+00 : f32
    %9 = vector.broadcast %cst_0 : f32 to vector<4x10xf32>
    %10 = arith.select %8, %9, %2 : vector<4x10xi1>, vector<4x10xf32>
    %c1_i32 = arith.constant 1 : i32
    %11 = vector.broadcast %c1_i32 : i32 to vector<4x10xi32>
    %12 = arith.cmpi eq, %1, %11 : vector<4x10xi32>
    %c1 = arith.constant 1 : index
    %13 = memref.load %arg0[%c1] : memref<4xi32, #tpu.memory_space<smem>>
    %14 = vector.broadcast %13 : i32 to vector<4x10xi32>
    %15 = arith.cmpi eq, %0, %14 : vector<4x10xi32>
    %16 = arith.andi %12, %15 : vector<4x10xi1>
    %cst_1 = arith.constant 1.000000e+00 : f32
    %17 = vector.broadcast %cst_1 : f32 to vector<4x10xf32>
    %18 = arith.select %16, %17, %10 : vector<4x10xi1>, vector<4x10xf32>
    %c2_i32 = arith.constant 2 : i32
    %19 = vector.broadcast %c2_i32 : i32 to vector<4x10xi32>
    %20 = arith.cmpi eq, %1, %19 : vector<4x10xi32>
    %c2 = arith.constant 2 : index
    %21 = memref.load %arg0[%c2] : memref<4xi32, #tpu.memory_space<smem>>
    %22 = vector.broadcast %21 : i32 to vector<4x10xi32>
    %23 = arith.cmpi eq, %0, %22 : vector<4x10xi32>
    %24 = arith.andi %20, %23 : vector<4x10xi1>
    %cst_2 = arith.constant 1.000000e+00 : f32
    %25 = vector.broadcast %cst_2 : f32 to vector<4x10xf32>
    %26 = arith.select %24, %25, %18 : vector<4x10xi1>, vector<4x10xf32>
    %c3_i32 = arith.constant 3 : i32
    %27 = vector.broadcast %c3_i32 : i32 to vector<4x10xi32>
    %28 = arith.cmpi eq, %1, %27 : vector<4x10xi32>
    %c3 = arith.constant 3 : index
    %29 = memref.load %arg0[%c3] : memref<4xi32, #tpu.memory_space<smem>>
    %30 = vector.broadcast %29 : i32 to vector<4x10xi32>
    %31 = arith.cmpi eq, %0, %30 : vector<4x10xi32>
    %32 = arith.andi %28, %31 : vector<4x10xi1>
    %cst_3 = arith.constant 1.000000e+00 : f32
    %33 = vector.broadcast %cst_3 : f32 to vector<4x10xf32>
    %34 = arith.select %32, %33, %26 : vector<4x10xi1>, vector<4x10xf32>
    %c0_4 = arith.constant 0 : index
    %c0_5 = arith.constant 0 : index
    %35 = vector.load %arg2[%c0_4, %c0_5] : memref<10x16xf32, #tpu.memory_space<vmem>>, vector<10x16xf32>
    %cst_6 = arith.constant dense<0.000000e+00> : vector<4x16xf32>
    %36 = tpu.matmul %34, %35, %cst_6 {dimension_numbers = #tpu.dot_dimension_numbers<[1], [0], [0], [1], [0, 0, 1, 1], [], []>} : vector<4x10xf32>, vector<10x16xf32>, vector<4x16xf32> -> vector<4x16xf32>
    %c0_7 = arith.constant 0 : index
    %c0_8 = arith.constant 0 : index
    %37 = vector.load %arg3[%c0_7, %c0_8] : memref<1x16xf32, #tpu.memory_space<vmem>>, vector<1x16xf32>
    %38 = vector.broadcast %37 : vector<1x16xf32> to vector<4x16xf32>
    %39 = arith.addf %36, %38 : vector<4x16xf32>
    %cst_9 = arith.constant 0.000000e+00 : f32
    %40 = vector.broadcast %cst_9 : f32 to vector<4x16xf32>
    %41 = arith.maximumf %39, %40 : vector<4x16xf32>
    %c0_10 = arith.constant 0 : index
    %c0_11 = arith.constant 0 : index
    %42 = vector.load %arg1[%c0_10, %c0_11] : memref<4x784xbf16, #tpu.memory_space<vmem>>, vector<4x784xbf16>
    %c0_12 = arith.constant 0 : index
    %c0_13 = arith.constant 0 : index
    %43 = vector.load %arg4[%c0_12, %c0_13] : memref<784x128xbf16, #tpu.memory_space<vmem>>, vector<784x128xbf16>
    %cst_14 = arith.constant dense<0.000000e+00> : vector<4x128xf32>
    %44 = tpu.matmul %42, %43, %cst_14 {dimension_numbers = #tpu.dot_dimension_numbers<[1], [0], [0], [1], [0, 0, 1, 1], [], []>} : vector<4x784xbf16>, vector<784x128xbf16>, vector<4x128xf32> -> vector<4x128xf32>
    %c0_15 = arith.constant 0 : index
    %c0_16 = arith.constant 0 : index
    %45 = vector.load %arg5[%c0_15, %c0_16] : memref<16x128xf32, #tpu.memory_space<vmem>>, vector<16x128xf32>
    %cst_17 = arith.constant dense<0.000000e+00> : vector<4x128xf32>
    %46 = tpu.matmul %41, %45, %cst_17 {dimension_numbers = #tpu.dot_dimension_numbers<[1], [0], [0], [1], [0, 0, 1, 1], [], []>} : vector<4x16xf32>, vector<16x128xf32>, vector<4x128xf32> -> vector<4x128xf32>
    %47 = arith.addf %44, %46 : vector<4x128xf32>
    %c0_18 = arith.constant 0 : index
    %c0_19 = arith.constant 0 : index
    %48 = vector.load %arg6[%c0_18, %c0_19] : memref<1x128xf32, #tpu.memory_space<vmem>>, vector<1x128xf32>
    %49 = vector.broadcast %48 : vector<1x128xf32> to vector<4x128xf32>
    %50 = arith.addf %47, %49 : vector<4x128xf32>
    %cst_20 = arith.constant 0.000000e+00 : f32
    %51 = vector.broadcast %cst_20 : f32 to vector<4x128xf32>
    %52 = arith.maximumf %50, %51 : vector<4x128xf32>
    %c0_21 = arith.constant 0 : index
    %c0_22 = arith.constant 0 : index
    %53 = vector.load %arg7[%c0_21, %c0_22] : memref<128x6xf32, #tpu.memory_space<vmem>>, vector<128x6xf32>
    %cst_23 = arith.constant dense<0.000000e+00> : vector<4x6xf32>
    %54 = tpu.matmul %52, %53, %cst_23 {dimension_numbers = #tpu.dot_dimension_numbers<[1], [0], [0], [1], [0, 0, 1, 1], [], []>} : vector<4x128xf32>, vector<128x6xf32>, vector<4x6xf32> -> vector<4x6xf32>
    %c0_24 = arith.constant 0 : index
    %c0_25 = arith.constant 0 : index
    %55 = vector.load %arg8[%c0_24, %c0_25] : memref<1x6xf32, #tpu.memory_space<vmem>>, vector<1x6xf32>
    %56 = vector.broadcast %55 : vector<1x6xf32> to vector<4x6xf32>
    %57 = arith.addf %54, %56 : vector<4x6xf32>
    %c0_26 = arith.constant 0 : index
    %c0_27 = arith.constant 0 : index
    %58 = vector.load %arg9[%c0_26, %c0_27] : memref<4x6xf32, #tpu.memory_space<vmem>>, vector<4x6xf32>
    tpu.vector_store %arg9[%c0_26, %c0_27], %57 {strides = array<i32>} : memref<4x6xf32, #tpu.memory_space<vmem>>, vector<4x6xf32>,
    return
  }
}

</mosaic_0001>

<bundles_post_ra>
// kernel: encoder_forward.1
= control target key start
LH: loop header
LB: loop body
LE: loop exit
PB: predicated region body
PF: predicated region fallthrough
CT: control target
= control target key end

     0   :  { %14 = vsyncpa [#allocation4], 0  ;;  %s1335_s0 = inlined_call_operand.vmem [shape: s32[4], index: 0, kind: input, shape index: {}]   ;;  %s1336_s1 = inlined_call_operand.vmem [shape: bf16[4,784], index: 1, kind: input, shape index: {}]   ;;  %s1337_s2 = inlined_call_operand.hbm [shape: f32[10,16], index: 2, kind: input, shape index: {}]   ;;  %s1338_s3 = inlined_call_operand.vmem [shape: f32[1,16], index: 3, kind: input, shape index: {}]   ;;  %s1339_s4 = inlined_call_operand.vmem [shape: bf16[784,128], index: 4, kind: input, shape index: {}]   ;;  %s1340_s5 = inlined_call_operand.hbm [shape: f32[16,128], index: 5, kind: input, shape index: {}]   ;;  %s1341_s6 = inlined_call_operand.vmem [shape: f32[1,128], index: 6, kind: input, shape index: {}]   ;;  %s1342_s7 = inlined_call_operand.vmem [shape: f32[128,6], index: 7, kind: input, shape index: {}]   ;;  %s1343_s8 = inlined_call_operand.vmem [shape: f32[1,6], index: 8, kind: input, shape index: {}]   ;;  %s1344_s9 = inlined_call_operand.vmem [shape: f32[4,6], index: 9, kind: output, shape index: {}]  }
   0x1   :  { %15 = vsyncpa [#allocation3], 0  ;;  %s22_s11 = sshll.u32 %s1335_s0, 4  ;;  %s23_s11 = int_to_ptr.vmem [resolvable:$true] %s22_s11 }
   0x2   :  { %16 = vsyncpa [#allocation7], 0  ;;  %s32_s14 = sshll.u32 %s1337_s2, 4  ;;  %s1054_s15 = smov [#allocation2]   ;;  %s33_s14 = int_to_ptr.hbm [resolvable:$true] %s32_s14 }
   0x3   :  { %25 = dma.vmem_to_smem %s23_s11, 16, %s1054_s15, [#allocation4]  }
   0x4   :  { %s1055_s16 = smov [#allocation5]   ;;  %s1056_s18 = smov 128  }
   0x5   :  { %s34_s17 = sshll.u32 %s1055_s16, 4  ;;  %s1057_s19 = smov 8   ;;  %s35_s17 = int_to_ptr.vmem [resolvable:$true] %s34_s17 }
   0x6   :  { %40 = dma.hbm_to_vmem [thread:$0]  %s33_s14, 256, %s35_s17, [#allocation3], %s1056_s18, %s1056_s18, %s1057_s19  }
   0x7   :  { %s49_s22 = sshll.u32 %s1340_s5, 4  ;;  %s1058_s0 = smov [#allocation6]   ;;  %s50_s22 = int_to_ptr.hbm [resolvable:$true] %s49_s22 }
   0x8   :  { %s51_s23 = sshll.u32 %s1058_s0, 4  ;;  %s52_s23 = int_to_ptr.vmem [resolvable:$true] %s51_s23 }
   0x9   :  { %57 = dma.hbm_to_vmem [thread:$0]  %s50_s22, 256, %s52_s23, [#allocation7], %s1056_s18, %s1056_s18, %s1057_s19  }
   0xa   :  { %1048 = dma.done.wait [#allocation4], 16  }
   0xb   :  { %1049 = vsyncadd [#allocation4], 4294967280 }
   0xc   :  { %1050 = dma.done.wait [#allocation3], 256  }
   0xd   :  { %1051 = vsyncadd [#allocation3], 4294967040 }
   0xe   :  { %1052 = dma.done.wait [#allocation7], 256  }
   0xf   :  { %1053 = vsyncadd [#allocation7], 4294967040 }
  0x10   :  { %76 = sfence }
  0x11   :  { %v107_v0 = vld [vmem:[#allocation5 + $0x8] sm:$0x3]  ;;  %vm116_vm0 = vcmask 1041408   ;;  %v106_v1 = vld [vmem:[#allocation5] sm:$0xff]  ;;  %v78_v2 = vlaneseq  ;;  %s83_s2 = sld [smem:[#allocation2]]  ;;  %v937_v3 = vld [vmem:[%s1339_s4 + $0x38] sm:$0xff] }
  0x12   :  { %730 = vmatpush.msk.msra.mxu0 %vm116_vm0, %v107_v0  ;;  %s727_s24 = sld [smem:[#allocation2 + $0x1]]  ;;  %v945_v4 = vld [vmem:[%s1339_s4 + $0x78] sm:$0xff]  ;;  %581 = vmatpush.bf16.msra.mxu2 %v937_v3  ;;  %v936_v7 = vld [vmem:[%s1339_s4 + $0x30] sm:$0xff]  ;;  %v935_v12 = vld [vmem:[%s1339_s4 + $0x28] sm:$0xff]  ;;  %v1059_v16 = vmov 0.0   ;;  %vm112_vm12 = vcmask 80896  }
  0x13   :  { %v81_v5 = vshrl.u32 %v78_v2, 7  ;;  %s728_s28 = sld [smem:[#allocation2 + $0x2]]  ;;  %v79_v6 = vand.u32 127, %v78_v2  ;;  %594 = vmatpush.bf16.msra.mxu3 %v945_v4  ;;  %v944_v8 = vld [vmem:[%s1339_s4 + $0x70] sm:$0xff]  ;;  %v953_v10 = vld [vmem:[%s1339_s4 + $0xb8] sm:$0xff]  ;;  %v943_v14 = vld [vmem:[%s1339_s4 + $0x68] sm:$0xff] }
  0x14   :  { %135 = vmatpush.msra.mxu0 %v106_v1  ;;  %s729_s29 = sld [smem:[#allocation2 + $0x3]]  ;;  %v952_v15 = vld [vmem:[%s1339_s4 + $0xb0] sm:$0xff]  ;;  %v934_v21 = vld [vmem:[%s1339_s4 + $0x20] sm:$0xff]  ;;  %v951_v25 = vld [vmem:[%s1339_s4 + $0xa8] sm:$0xff]  ;;  %vm243_vm14 = vcmask 130048   ;;  %vm718_vm15 = vcmask 44032  }
  0x15   :  { %vm82_vm1 = vcmp.eq.s32.totalorder %v81_v5, 0  ;;  %vm88_vm2 = vcmp.eq.s32.totalorder %v81_v5, 1  ;;  %vm94_vm4 = vcmp.eq.s32.totalorder %v81_v5, 2  ;;  %vm100_vm7 = vcmp.eq.s32.totalorder %v81_v5, 3  ;;  %v242_v22 = vld [vmem:[#allocation6 + $0x8] sm:$0xff]  ;;  %v241_v26 = vld [vmem:[#allocation6] sm:$0xff] }
  0x16   :  { %582 = vmatpush.bf16.msra.mxu2 %v936_v7  ;;  %607 = vmatpush.bf16.msrb.mxu0 %v953_v10  ;;  %v942_v24 = vld [vmem:[%s1339_s4 + $0x60] sm:$0xff]  ;;  %v961_v27 = vld [vmem:[%s1339_s4 + $0xf8] sm:$0xff]  ;;  %v960_v32 = vld [vmem:[%s1339_s4 + $0xf0] sm:$0xff] }
  0x17   :  { %v84_v9 = vstv %s83_s2  ;;  %595 = vmatpush.bf16.msra.mxu3 %v944_v8  ;;  %261 = vmatpush.msra.mxu1 %v242_v22  ;;  %v141_v28 = vld [vmem:[%s1336_s1] sm:$0xff]  ;;  %v933_v29 = vld [vmem:[%s1339_s4 + $0x18] sm:$0xff]  ;;  %v932_v33 = vld [vmem:[%s1339_s4 + $0x10] sm:$0xff] }
  0x18   :  { %vm85_vm3 = vcmp.eq.s32.totalorder %v79_v6, %v84_v9  ;;  %v90_v11 = vstv %s727_s24  ;;  %268 = vst [vmem:[#allocation1] ss:$4 sm:$0xff] %v141_v28  ;;  %v941_v30 = vld [vmem:[%s1339_s4 + $0x58] sm:$0xff]  ;;  %v950_v31 = vld [vmem:[%s1339_s4 + $0xa0] sm:$0xff]  ;;  %v940_v34 = vld [vmem:[%s1339_s4 + $0x50] sm:$0xff] }
  0x19   :  { %vm86_vm5 = vmand %vm82_vm1, %vm85_vm3  ;;  %vm91_vm6 = vcmp.eq.s32.totalorder %v79_v6, %v90_v11  ;;  %v96_v13 = vstv %s728_s28  ;;  %262 = vmatpush.msra.mxu1 %v241_v26  ;;  %v949_v35 = vld [vmem:[%s1339_s4 + $0x98] sm:$0xff]  ;;  %v959_v36 = vld [vmem:[%s1339_s4 + $0xe8] sm:$0xff] }
  0x1a   :  { %v87_v17 = vsel %vm86_vm5, 1.0, %v1059_v16  ;;  %vm92_vm8 = vmand %vm88_vm2, %vm91_vm6  ;;  %vm97_vm9 = vcmp.eq.s32.totalorder %v79_v6, %v96_v13  ;;  %v102_v18 = vstv %s729_s29  ;;  %583 = vmatpush.bf16.msra.mxu2 %v935_v12  ;;  %608 = vmatpush.bf16.msrb.mxu0 %v952_v15  ;;  %v931_v37 = vld [vmem:[%s1339_s4 + $0x8] sm:$0xff]  ;;  %v948_v39 = vld [vmem:[%s1339_s4 + $0x90] sm:$0xff] }
  0x1b   :  { %v93_v19 = vsel %vm92_vm8, 1.0, %v87_v17  ;;  %vm98_vm10 = vmand %vm94_vm4, %vm97_vm9  ;;  %vm103_vm11 = vcmp.eq.s32.totalorder %v79_v6, %v102_v18  ;;  %596 = vmatpush.bf16.msra.mxu3 %v943_v14  ;;  %620 = vmatpush.bf16.msrb.mxu1 %v961_v27  ;;  %v939_v38 = vld [vmem:[%s1339_s4 + $0x48] sm:$0xff]  ;;  %v958_v40 = vld [vmem:[%s1339_s4 + $0xe0] sm:$0xff] }
  0x1c   :  { %v99_v20 = vsel %vm98_vm10, 1.0, %v93_v19  ;;  %vm104_vm13 = vmand %vm100_vm7, %vm103_vm11  ;;  %v930_v41 = vld [vmem:[%s1339_s4] sm:$0xff]  ;;  %v969_v42 = vld [vmem:[%s1339_s4 + $0x138] sm:$0xff] }
  0x1d   :  { %v105_v23 = vsel %vm104_vm13, 1.0, %v99_v20  ;;  %v938_v43 = vld [vmem:[%s1339_s4 + $0x40] sm:$0xff]  ;;  %v977_v44 = vld [vmem:[%s1339_s4 + $0x178] sm:$0xff]  ;;  %v947_v45 = vld [vmem:[%s1339_s4 + $0x88] sm:$0xff] }
  0x1e   :  { %731 = vmatmul.msk.f32.vlgmr.msra.gmra.mxu0 %vm112_vm12, %v105_v23  ;;  %584 = vmatpush.bf16.msra.mxu2 %v934_v21  ;;  %v957_v46 = vld [vmem:[%s1339_s4 + $0xd8] sm:$0xff]  ;;  %v968_v48 = vld [vmem:[%s1339_s4 + $0x130] sm:$0xff]  ;;  %v946_v51 = vld [vmem:[%s1339_s4 + $0x80] sm:$0xff] }
  0x1f   :  { %597 = vmatpush.bf16.msra.mxu3 %v942_v24  ;;  %609 = vmatpush.bf16.msrb.mxu0 %v951_v25  ;;  %v272_v47 = vld.sshfl [vmem:[#allocation1] sm:$0xff pattern:$0x73625140]  ;;  %v273_v49 = vld.sshfl [vmem:[#allocation1 + $0x8] sm:$0xff pattern:$0x73625140] }
  0x20   :  { %621 = vmatpush.bf16.msrb.mxu1 %v960_v32  ;;  %v976_v50 = vld [vmem:[%s1339_s4 + $0x170] sm:$0xff]  ;;  %v967_v52 = vld [vmem:[%s1339_s4 + $0x128] sm:$0xff]  ;;  %v966_v55 = vld [vmem:[%s1339_s4 + $0x120] sm:$0xff] }
  0x21   :  { %v975_v53 = vld [vmem:[%s1339_s4 + $0x168] sm:$0xff]  ;;  %v274_v54 = vld.sshfl [vmem:[#allocation1 + $0x10] sm:$0xff pattern:$0x73625140]  ;;  %v974_v56 = vld [vmem:[%s1339_s4 + $0x160] sm:$0xff] }
  0x22   :  { %585 = vmatpush.bf16.msra.mxu2 %v933_v29  ;;  %v965_v57 = vld [vmem:[%s1339_s4 + $0x118] sm:$0xff]  ;;  %v964_v59 = vld [vmem:[%s1339_s4 + $0x110] sm:$0xff]  ;;  %v963_v61 = vld [vmem:[%s1339_s4 + $0x108] sm:$0xff] }
  0x23   :  { %598 = vmatpush.bf16.msra.mxu3 %v941_v30  ;;  %610 = vmatpush.bf16.msrb.mxu0 %v950_v31  ;;  %v973_v58 = vld [vmem:[%s1339_s4 + $0x158] sm:$0xff]  ;;  %v972_v60 = vld [vmem:[%s1339_s4 + $0x150] sm:$0xff]  ;;  %v971_v62 = vld [vmem:[%s1339_s4 + $0x148] sm:$0xff] }
  0x24   :  { %622 = vmatpush.bf16.msrb.mxu1 %v959_v36  ;;  %v962_v63 = vld [vmem:[%s1339_s4 + $0x100] sm:$0xff]  ;;  %v142_v0 = vld [vmem:[%s1336_s1 + $0x8] sm:$0x3f]  ;;  %v956_v3 = vld [vmem:[%s1339_s4 + $0xd0] sm:$0xff] }
  0x25   :  { %271 = vst [vmem:[#allocation1 + $0x20] ss:$4 sm:$0xff] %v142_v0  ;;  %v970_v1 = vld [vmem:[%s1339_s4 + $0x140] sm:$0xff]  ;;  %v955_v6 = vld [vmem:[%s1339_s4 + $0xc8] sm:$0xff]  ;;  %v693_v13 = vld [vmem:[%s1342_s7 + $0x78] sm:$0xff] }
  0x26   :  { %586 = vmatpush.bf16.msra.mxu2 %v932_v33  ;;  %v978_v5 = vld [vmem:[%s1339_s4 + $0x180] sm:$0xff]  ;;  %v692_v14 = vld [vmem:[%s1342_s7 + $0x70] sm:$0xff]  ;;  %v691_v15 = vld [vmem:[%s1342_s7 + $0x68] sm:$0xff] }
  0x27   :  { %599 = vmatpush.bf16.msra.mxu3 %v940_v34  ;;  %611 = vmatpush.bf16.msrb.mxu0 %v949_v35  ;;  %v954_v8 = vld [vmem:[%s1339_s4 + $0xc0] sm:$0xff]  ;;  %v275_v17 = vld.sshfl [vmem:[#allocation1 + $0x18] sm:$0xff pattern:$0x73625140]  ;;  %v688_v25 = vld [vmem:[%s1342_s7 + $0x50] sm:$0xff] }
  0x28   :  { %623 = vmatpush.bf16.msrb.mxu1 %v958_v40  ;;  %v985_v9 = vld [vmem:[%s1338_s3] ss:$0 sm:$0xff]  ;;  %v689_v18 = vld [vmem:[%s1342_s7 + $0x58] sm:$0xff]  ;;  %v687_v26 = vld [vmem:[%s1342_s7 + $0x48] sm:$0xff] }
  0x29   :  { %v690_v16 = vld [vmem:[%s1342_s7 + $0x60] sm:$0xff]  ;;  %v685_v30 = vld [vmem:[%s1342_s7 + $0x38] sm:$0xff]  ;;  %v684_v32 = vld [vmem:[%s1342_s7 + $0x30] sm:$0xff] }
  0x2a   :  { %587 = vmatpush.bf16.msra.mxu2 %v931_v37  ;;  %v686_v28 = vld [vmem:[%s1342_s7 + $0x40] sm:$0xff]  ;;  %v683_v33 = vld [vmem:[%s1342_s7 + $0x28] sm:$0xff] }
  0x2b   :  { %600 = vmatpush.bf16.msra.mxu3 %v939_v38  ;;  %612 = vmatpush.bf16.msrb.mxu0 %v948_v39  ;;  %v682_v35 = vld [vmem:[%s1342_s7 + $0x20] sm:$0xff]  ;;  %v681_v38 = vld [vmem:[%s1342_s7 + $0x18] sm:$0xff]  ;;  %v680_v39 = vld [vmem:[%s1342_s7 + $0x10] sm:$0xff] }
  0x2c   :  { %624 = vmatpush.bf16.msrb.mxu1 %v957_v46  ;;  %v276_v2 = vld.sshfl [vmem:[#allocation1 + $0x20] sm:$0xff pattern:$0x73625140]  ;;  %v277_v4 = vld.sshfl [vmem:[#allocation1 + $0x28] sm:$0xff pattern:$0x73625140] }
  0x2d   :  { %v278_v7 = vld.sshfl [vmem:[#allocation1 + $0x30] sm:$0xff pattern:$0x73625140]  ;;  %v679_v40 = vld [vmem:[%s1342_s7 + $0x8] sm:$0xff] }
  0x2e   :  { %588 = vmatpush.bf16.msra.mxu2 %v930_v41  ;;  %v678_v41 = vld [vmem:[%s1342_s7] sm:$0xff] }
  0x2f   :  { %601 = vmatpush.bf16.msra.mxu3 %v938_v43  ;;  %613 = vmatpush.bf16.msrb.mxu0 %v947_v45 }
  0x30   :  { %625 = vmatpush.bf16.msrb.mxu1 %v956_v3 }
  0x31   :  { %589 = vmatmul.bf16.vlgmr.msra.gmra.mxu2 %v272_v47 }
  0x32   :  { %633 = vmatpush.bf16.msrb.mxu2 %v969_v42  ;;  %602 = vmatmul.bf16.vlgmr.msra.gmra.mxu3 %v273_v49 }
  0x33   :  { %646 = vmatpush.bf16.msrb.mxu3 %v977_v44  ;;  %614 = vmatpush.bf16.msrb.mxu0 %v946_v51 }
  0x34   :  { %626 = vmatpush.bf16.msrb.mxu1 %v955_v6 }
  0x36   :  { %634 = vmatpush.bf16.msrb.mxu2 %v968_v48  ;;  %615 = vmatmul.bf16.vlgmr.msrb.gmra.mxu0 %v274_v54 }
  0x37   :  { %647 = vmatpush.bf16.msrb.mxu3 %v976_v50  ;;  %666 = vmatpush.bf16.msra.mxu0 %v978_v5  ;;  %v986_v50 = vld [vmem:[%s1341_s6] ss:$0 sm:$0xff] }
  0x38   :  { %627 = vmatpush.bf16.msrb.mxu1 %v954_v8 }
  0x3a   :  { %635 = vmatpush.bf16.msrb.mxu2 %v967_v52 }
  0x3b   :  { %648 = vmatpush.bf16.msrb.mxu3 %v975_v53 }
  0x3e   :  { %636 = vmatpush.bf16.msrb.mxu2 %v966_v55  ;;  %v987_v55 = vld [vmem:[%s1343_s8] ss:$0 sm:$0xff] }
  0x3f   :  { %649 = vmatpush.bf16.msrb.mxu3 %v974_v56 }
  0x42   :  { %637 = vmatpush.bf16.msrb.mxu2 %v965_v57 }
  0x43   :  { %650 = vmatpush.bf16.msrb.mxu3 %v973_v58 }
  0x46   :  { %638 = vmatpush.bf16.msrb.mxu2 %v964_v59  ;;  %929 = vmatmul.msk.bf16.vlgmr.msra.gmra.mxu0 %vm243_vm14, %v278_v7 }
  0x47   :  { %651 = vmatpush.bf16.msrb.mxu3 %v972_v60 }
  0x4a   :  { %639 = vmatpush.bf16.msrb.mxu2 %v963_v61 }
  0x4b   :  { %652 = vmatpush.bf16.msrb.mxu3 %v971_v62 }
  0x4e   :  { %640 = vmatpush.bf16.msrb.mxu2 %v962_v63 }
  0x4f   :  { %653 = vmatpush.bf16.msrb.mxu3 %v970_v1 }
  0x51   :  { %641 = vmatmul.bf16.vlgmr.msrb.gmra.mxu2 %v276_v2 }
  0x52   :  { %654 = vmatmul.bf16.vlgmr.msrb.gmra.mxu3 %v277_v4 }
  0x9b   :  { %v137_v10 = vpop.f32.mrf.mxu0 }
  0x9c   :  { %v138_v11 = vadd.f32 %v985_v9, %v137_v10 }
  0x9e   :  { %v140_v12 = vmax.f32 %v138_v11, 0.0 }
  0xa0   :  { %732 = vmatmul.msk.f32.vlgmr.msra.gmra.mxu1 %vm243_vm14, %v140_v12 }
  0xa1   :  { %698 = vmatpush.msra.mxu1 %v693_v13 }
  0xa3   :  { %699 = vmatpush.msra.mxu1 %v692_v14 }
  0xa5   :  { %700 = vmatpush.msra.mxu1 %v691_v15 }
  0xa7   :  { %701 = vmatpush.msra.mxu1 %v690_v16 }
  0xa8   :  { %628 = vmatmul.bf16.vlgmr.msrb.gmra.mxu1 %v275_v17 }
  0xa9   :  { %702 = vmatpush.msra.mxu1 %v689_v18 }
  0xab   :  { %703 = vmatpush.msra.mxu1 %v688_v25 }
  0xad   :  { %704 = vmatpush.msra.mxu1 %v687_v26 }
  0xaf   :  { %705 = vmatpush.msra.mxu1 %v686_v28 }
  0xb1   :  { %706 = vmatpush.msra.mxu1 %v685_v30 }
  0xb3   :  { %v616_v20 = vpop.f32.mrf.mxu0  ;;  %707 = vmatpush.msra.mxu1 %v684_v32 }
  0xb4   :  { %v590_v19 = vpop.f32.mrf.mxu2 }
  0xb5   :  { %v603_v21 = vpop.f32.mrf.mxu3  ;;  %708 = vmatpush.msra.mxu1 %v683_v33 }
  0xb7   :  { %709 = vmatpush.msra.mxu1 %v682_v35 }
  0xb9   :  { %710 = vmatpush.msra.mxu1 %v681_v38 }
  0xbb   :  { %v618_v23 = vpop.f32.mrf.mxu0  ;;  %711 = vmatpush.msra.mxu1 %v680_v39 }
  0xbc   :  { %v592_v22 = vpop.f32.mrf.mxu2 }
  0xbd   :  { %v605_v24 = vpop.f32.mrf.mxu3  ;;  %712 = vmatpush.msra.mxu1 %v679_v40 }
  0xbf   :  { %713 = vmatpush.msra.mxu1 %v678_v41 }
  0xc3   :  { %v668_v29 = vpop.f32.mrf.mxu0 }
  0xcb   :  { %v670_v36 = vpop.f32.mrf.mxu0 }
  0xd4   :  { %v642_v27 = vpop.f32.mrf.mxu2 }
  0xd5   :  { %v655_v31 = vpop.f32.mrf.mxu3 }
  0xdc   :  { %v644_v34 = vpop.f32.mrf.mxu2 }
  0xdd   :  { %v657_v37 = vpop.f32.mrf.mxu3 }
 0x11d   :  { %v264_v42 = vpop.f32.mrf.mxu1 }
 0x11e   :  { %v591_v43 = vadd.f32 %v590_v19, %v264_v42 }
 0x120   :  { %v604_v44 = vadd.f32 %v603_v21, %v591_v43 }
 0x122   :  { %v617_v45 = vadd.f32 %v616_v20, %v604_v44 }
 0x125   :  { %v629_v46 = vpop.f32.mrf.mxu1 }
 0x126   :  { %v630_v47 = vadd.f32 %v629_v46, %v617_v45 }
 0x128   :  { %v643_v48 = vadd.f32 %v642_v27, %v630_v47 }
 0x12a   :  { %v656_v49 = vadd.f32 %v655_v31, %v643_v48 }
 0x12c   :  { %v669_v51 = vadd.f32 %v668_v29, %v656_v49 }
 0x12d   :  { %v631_v52 = vpop.f32.mrf.mxu1 }
 0x12e   :  { %v676_v53 = vadd.f32 %v986_v50, %v669_v51 }
 0x130   :  { %v677_v54 = vmax.f32 %v676_v53, 0.0 }
 0x132   :  { %714 = vmatmul.f32.vlgmr.msra.gmra.mxu1 %v677_v54 }
 0x1af   :  { %v715_v56 = vpop.f32.mrf.mxu1 }
 0x1b0   :  { %v716_v57 = vadd.f32 %v987_v55, %v715_v56 }
 0x1b2   :  { %719 = vst.msk [vmem:[%s1344_s9] sm:$0xf] %vm718_vm15, %v716_v57 }
 0x1b3   :  { %724 = vsyncpa [#allocation3], 1 }
 0x1b4   :  { %725 = vsyncpa [#allocation7], 1 }
 0x1b5   :  { %726 = vsyncpa [#allocation4], 1 }

</bundles_post_ra>
